<compile_context>
chip_gen: v7x
topology: tpu7x:2x2x1
jax: 0.10.0
libtpu: 0.0.40
codegen_flags: <defaults>
</compile_context>

<pallas_src>
import functools

import jax
import jax.numpy as jnp
from jax.experimental import pallas as pl
from jax.experimental.pallas import tpu as pltpu


def _round_up(x, m):
    return ((x + m - 1) // m) * m


def _qnet_fused_kernel(obs_ref, w1_ref, w2_ref, wq_ref, b_ref, q_ref):
    """Fused 3-layer MLP for all agents at once (block-diagonal weights).

    obs_ref: (TILE_B, A*n_obs) bf16
    w1_ref : (A*n_obs, A*64)   bf16      w2_ref: (A*64, A*32) bf16
    wq_ref : (A*32, PAD)       bf16      b_ref : (1, seg1+seg2+PAD) f32
    q_ref  : (TILE_B, PAD)     f32
    """
    n_h1 = w1_ref.shape[1]            # A*64
    n_h2 = w2_ref.shape[1]            # A*32
    n_out = wq_ref.shape[1]           # PAD (multiple of 128)
    off2 = _round_up(n_h1, 128)       # lane-aligned bias segment offsets
    off3 = off2 + _round_up(n_h2, 128)

    # Static, lane-aligned slices of the concatenated bias row (free).
    b1 = b_ref[:, 0:n_h1]
    b2 = b_ref[:, off2:off2 + n_h2]
    bq = b_ref[:, off3:off3 + n_out]

    x = obs_ref[...]                                                  # bf16
    h1 = jnp.dot(x, w1_ref[...], preferred_element_type=jnp.float32) + b1
    h1 = jnp.maximum(h1, 0.0)                                         # f32 (TILE_B, A*64)
    h2 = jnp.dot(h1.astype(w2_ref.dtype), w2_ref[...],
                 preferred_element_type=jnp.float32) + b2
    h2 = jnp.maximum(h2, 0.0)                                         # f32 (TILE_B, A*32)
    q = jnp.dot(h2.astype(wq_ref.dtype), wq_ref[...],
                preferred_element_type=jnp.float32) + bq
    q_ref[...] = q.astype(q_ref.dtype)                                # (TILE_B, PAD), full-lane vst


def pack_params(params, *, compute_dtype=jnp.bfloat16):
    """Pack stacked per-agent weights into block-diagonal fused matrices.

    params: w1 (A, n_obs, 64), b1 (A, 1, 64), w2 (A, 64, 32), b2 (A, 1, 32),
            wq (A, 32, n_act), bq (A, 1, n_act)
    Returns arrays only (safe to pass through jit):
      W1 (A*n_obs, A*64) bf16, W2 (A*64, A*32) bf16, Wq (A*32, PAD) bf16,
      b_all (1, seg1+seg2+PAD) f32 with each bias segment starting at a
      lane-aligned (multiple of 128) offset; PAD = round_up(A*n_act, 128).

    NOTE: block-diagonal packing costs O(A^2) weight bytes / MXU FLOPs.  Fine
    for small A (A=3 here); switch to an agent grid axis for large A.
    """
    A, n_obs, h1 = params["w1"].shape
    hx = params["w2"].shape[2]
    n_act = params["wq"].shape[2]
    pad = _round_up(max(A * n_act, 128), 128)   # lane-dense output width

    def bd(w):  # (A, in, out) -> block-diagonal (A*in, A*out)
        return jax.scipy.linalg.block_diag(*[w[a] for a in range(w.shape[0])])

    W1 = bd(params["w1"]).astype(compute_dtype)                 # (A*n_obs, A*h1)
    W2 = bd(params["w2"]).astype(compute_dtype)                 # (A*h1, A*hx)
    Wq = jnp.pad(bd(params["wq"]),
                 ((0, 0), (0, pad - A * n_act))).astype(compute_dtype)

    seg1 = _round_up(A * h1, 128)
    seg2 = _round_up(A * hx, 128)
    b_all = jnp.zeros((1, seg1 + seg2 + pad), jnp.float32)
    b_all = b_all.at[0, 0:A * h1].set(params["b1"].reshape(-1))
    b_all = b_all.at[0, seg1:seg1 + A * hx].set(params["b2"].reshape(-1))
    b_all = b_all.at[0, seg1 + seg2:seg1 + seg2 + A * n_act].set(
        params["bq"].reshape(-1))

    return {"W1": W1, "W2": W2, "Wq": Wq, "b_all": b_all}


def qnet_forward(obs, hidden, packed, *, n_act, tile_b=512):
    """obs: (B, A, n_obs) f32, hidden: (B, A, hx) f32, packed: pack_params output.

    Returns (q_values (B, A, n_act), next_hidden (B, A, hx)).
    """
    B, A, n_obs = obs.shape
    hx = hidden.shape[2]
    pad = packed["Wq"].shape[1]
    compute_dtype = packed["W1"].dtype

    # Free row-major view fusing agent/feature axes; cast once to bf16 for MXU.
    obs2d = obs.reshape(B, A * n_obs).astype(compute_dtype)

    # Batch tiling: TILE_B is a multiple of 16 (bf16 sublane packing); pad B up
    # so the grid divides evenly.  Padded rows compute garbage, sliced away.
    tile_b = min(tile_b, _round_up(B, 16))
    b_pad = _round_up(B, tile_b)
    if b_pad != B:
        obs2d = jnp.pad(obs2d, ((0, b_pad - B), (0, 0)))
    grid = (b_pad // tile_b,)

    # Advisory cost estimate for XLA's scheduler.
    k1 = A * n_obs
    n1 = packed["W1"].shape[1]
    n2 = packed["W2"].shape[1]
    flops = 2 * b_pad * (k1 * n1 + n1 * n2 + n2 * pad)
    bytes_accessed = int(
        obs2d.size * obs2d.dtype.itemsize
        + packed["W1"].size * packed["W1"].dtype.itemsize
        + packed["W2"].size * packed["W2"].dtype.itemsize
        + packed["Wq"].size * packed["Wq"].dtype.itemsize
        + packed["b_all"].size * 4
        + b_pad * pad * 4)

    q_pad = pl.pallas_call(
        _qnet_fused_kernel,
        out_shape=jax.ShapeDtypeStruct((b_pad, pad), jnp.float32),
        grid=grid,
        in_specs=[
            pl.BlockSpec((tile_b, A * n_obs), lambda i: (i, 0)),       # obs tile
            pl.BlockSpec(packed["W1"].shape, lambda i: (0, 0)),        # resident
            pl.BlockSpec(packed["W2"].shape, lambda i: (0, 0)),        # resident
            pl.BlockSpec(packed["Wq"].shape, lambda i: (0, 0)),        # resident
            pl.BlockSpec(packed["b_all"].shape, lambda i: (0, 0)),     # resident
        ],
        out_specs=pl.BlockSpec((tile_b, pad), lambda i: (i, 0)),
        compiler_params=pltpu.CompilerParams(
            dimension_semantics=("parallel",)),                        # megacore on v7x
        cost_estimate=pl.CostEstimate(
            flops=flops, transcendentals=0, bytes_accessed=bytes_accessed),
    )(obs2d, packed["W1"], packed["W2"], packed["Wq"], packed["b_all"])

    # Large-B consumers should take q_pad[:, :A*n_act]-style padded layout
    # directly to avoid this extra HBM round trip; for the module-faithful API
    # we return the exact (B, A, n_act) shape here.
    q_values = q_pad[:B, : A * n_act].reshape(B, A, n_act)

    # TODO(synk): PyTorch returns uninitialized torch.empty tensors for
    # next_hidden when recurrent=False (values undefined); we return zeros.
    next_hidden = jnp.zeros((B, A, hx), dtype=jnp.float32)
    return q_values, next_hidden


def init_params(key, num_agents, n_obs, n_act, h1=64, hx=32):
    """Deterministic PyTorch-style uniform(-1/sqrt(fan_in), 1/sqrt(fan_in)) init."""
    ks = jax.random.split(key, 6)

    def u(k, shape, fan_in):
        bound = 1.0 / jnp.sqrt(float(fan_in))
        return jax.random.uniform(k, shape, jnp.float32, -bound, bound)

    return {
        "w1": u(ks[0], (num_agents, n_obs, h1), n_obs),
        "b1": u(ks[1], (num_agents, 1, h1), n_obs),
        "w2": u(ks[2], (num_agents, h1, hx), h1),
        "b2": u(ks[3], (num_agents, 1, hx), h1),
        "wq": u(ks[4], (num_agents, hx, n_act), hx),
        "bq": u(ks[5], (num_agents, 1, n_act), hx),
    }


def qnet_forward_ref(obs, params):
    """Pure-JAX f32 reference of the per-agent MLP stack (unfused)."""
    h1 = jax.nn.relu(jnp.einsum("bai,aio->bao", obs, params["w1"])
                     + params["b1"].transpose(1, 0, 2))
    h2 = jax.nn.relu(jnp.einsum("bai,aio->bao", h1, params["w2"])
                     + params["b2"].transpose(1, 0, 2))
    q = (jnp.einsum("bai,aio->bao", h2, params["wq"])
         + params["bq"].transpose(1, 0, 2))
    return q


if __name__ == "__main__":
    key = jax.random.PRNGKey(0)
    k_obs, k_par = jax.random.split(key)

    # Small demo shapes consistent with the module.  For real workloads batch
    # multiple envs/timesteps so B >= 256 (MXU utilization / perf review item).
    batch = 8
    num_agents = 3
    n_obs = 16
    n_act = 8
    hx = 32

    obs = jax.random.normal(k_obs, (batch, num_agents, n_obs), jnp.float32)
    hidden = jnp.zeros((batch, num_agents, hx), jnp.float32)   # QNet.init_hidden()
    params = init_params(k_par, num_agents, n_obs, n_act, h1=64, hx=hx)

    packed = pack_params(params)   # one-time packing (bf16), outside the hot path

    fwd = jax.jit(functools.partial(qnet_forward, n_act=n_act))
    q_values, next_hidden = fwd(obs, hidden, packed)
    jax.block_until_ready(q_values)
    jax.block_until_ready(next_hidden)

    assert q_values.shape == (batch, num_agents, n_act)
    assert next_hidden.shape == (batch, num_agents, hx)

    # bf16 weights/activations with f32 accumulation -> loosened tolerance
    # vs. the pure-f32 reference.
    q_ref = qnet_forward_ref(obs, params)
    assert jnp.allclose(q_values, q_ref, atol=3e-2, rtol=3e-2), "mismatch vs reference"

    print("KERNEL_OK")
</pallas_src>

<mosaic_0001>
module attributes {stable_mosaic.version = 11 : i64} {
  func.func @_qnet_fused_kernel(%arg0: i32, %arg1: memref<16x48xbf16, #tpu.memory_space<vmem>>, %arg2: memref<48x192xbf16, #tpu.memory_space<vmem>>, %arg3: memref<192x96xbf16, #tpu.memory_space<vmem>>, %arg4: memref<96x128xbf16, #tpu.memory_space<vmem>>, %arg5: memref<1x512xf32, #tpu.memory_space<vmem>>, %arg6: memref<16x128xf32, #tpu.memory_space<vmem>>) attributes {dimension_semantics = [#tpu.dimension_semantics<parallel>], iteration_bounds = array<i64: 1>, scalar_prefetch = 0 : i64, scratch_operands = 0 : i64, tpu.core_type = #tpu.core_type<tc>, window_params = [{transform_indices = @transform_0, window_bounds = array<i64: 16, 48>}, {pipeline_mode = #tpu.pipeline_mode<synchronous>, transform_indices = @transform_1, window_bounds = array<i64: 48, 192>}, {pipeline_mode = #tpu.pipeline_mode<synchronous>, transform_indices = @transform_2, window_bounds = array<i64: 192, 96>}, {pipeline_mode = #tpu.pipeline_mode<synchronous>, transform_indices = @transform_3, window_bounds = array<i64: 96, 128>}, {pipeline_mode = #tpu.pipeline_mode<synchronous>, transform_indices = @transform_4, window_bounds = array<i64: 1, 512>}, {transform_indices = @transform_5, window_bounds = array<i64: 16, 128>}]} {
    %c0 = arith.constant 0 : index
    %c0_0 = arith.constant 0 : index
    %0 = vector.load %arg5[%c0, %c0_0] : memref<1x512xf32, #tpu.memory_space<vmem>>, vector<1x192xf32>
    %c0_1 = arith.constant 0 : index
    %c256 = arith.constant 256 : index
    %1 = vector.load %arg5[%c0_1, %c256] : memref<1x512xf32, #tpu.memory_space<vmem>>, vector<1x96xf32>
    %c0_2 = arith.constant 0 : index
    %c384 = arith.constant 384 : index
    %2 = vector.load %arg5[%c0_2, %c384] : memref<1x512xf32, #tpu.memory_space<vmem>>, vector<1x128xf32>
    %c0_3 = arith.constant 0 : index
    %c0_4 = arith.constant 0 : index
    %3 = vector.load %arg1[%c0_3, %c0_4] : memref<16x48xbf16, #tpu.memory_space<vmem>>, vector<16x48xbf16>
    %c0_5 = arith.constant 0 : index
    %c0_6 = arith.constant 0 : index
    %4 = vector.load %arg2[%c0_5, %c0_6] : memref<48x192xbf16, #tpu.memory_space<vmem>>, vector<48x192xbf16>
    %cst = arith.constant dense<0.000000e+00> : vector<16x192xf32>
    %5 = tpu.matmul %3, %4, %cst {dimension_numbers = #tpu.dot_dimension_numbers<[1], [0], [0], [1], [0, 0, 1, 1], [], []>} : vector<16x48xbf16>, vector<48x192xbf16>, vector<16x192xf32> -> vector<16x192xf32>
    %6 = vector.broadcast %0 : vector<1x192xf32> to vector<16x192xf32>
    %7 = arith.addf %5, %6 : vector<16x192xf32>
    %cst_7 = arith.constant 0.000000e+00 : f32
    %8 = vector.broadcast %cst_7 : f32 to vector<16x192xf32>
    %9 = arith.maximumf %7, %8 : vector<16x192xf32>
    %10 = arith.truncf %9 : vector<16x192xf32> to vector<16x192xbf16>
    %c0_8 = arith.constant 0 : index
    %c0_9 = arith.constant 0 : index
    %11 = vector.load %arg3[%c0_8, %c0_9] : memref<192x96xbf16, #tpu.memory_space<vmem>>, vector<192x96xbf16>
    %cst_10 = arith.constant dense<0.000000e+00> : vector<16x96xf32>
    %12 = tpu.matmul %10, %11, %cst_10 {dimension_numbers = #tpu.dot_dimension_numbers<[1], [0], [0], [1], [0, 0, 1, 1], [], []>} : vector<16x192xbf16>, vector<192x96xbf16>, vector<16x96xf32> -> vector<16x96xf32>
    %13 = vector.broadcast %1 : vector<1x96xf32> to vector<16x96xf32>
    %14 = arith.addf %12, %13 : vector<16x96xf32>
    %cst_11 = arith.constant 0.000000e+00 : f32
    %15 = vector.broadcast %cst_11 : f32 to vector<16x96xf32>
    %16 = arith.maximumf %14, %15 : vector<16x96xf32>
    %17 = arith.truncf %16 : vector<16x96xf32> to vector<16x96xbf16>
    %c0_12 = arith.constant 0 : index
    %c0_13 = arith.constant 0 : index
    %18 = vector.load %arg4[%c0_12, %c0_13] : memref<96x128xbf16, #tpu.memory_space<vmem>>, vector<96x128xbf16>
    %cst_14 = arith.constant dense<0.000000e+00> : vector<16x128xf32>
    %19 = tpu.matmul %17, %18, %cst_14 {dimension_numbers = #tpu.dot_dimension_numbers<[1], [0], [0], [1], [0, 0, 1, 1], [], []>} : vector<16x96xbf16>, vector<96x128xbf16>, vector<16x128xf32> -> vector<16x128xf32>
    %20 = vector.broadcast %2 : vector<1x128xf32> to vector<16x128xf32>
    %21 = arith.addf %19, %20 : vector<16x128xf32>
    %c0_15 = arith.constant 0 : index
    %c0_16 = arith.constant 0 : index
    %22 = vector.load %arg6[%c0_15, %c0_16] : memref<16x128xf32, #tpu.memory_space<vmem>>, vector<16x128xf32>
    tpu.vector_store %arg6[%c0_15, %c0_16], %21 {strides = array<i32>} : memref<16x128xf32, #tpu.memory_space<vmem>>, vector<16x128xf32>,
    return
  }
  func.func @transform_0(%arg0: i32) -> (i32, i32) {
    %c0_i32 = arith.constant 0 : i32
    %c0_i32_0 = arith.constant 0 : i32
    return %arg0, %c0_i32 : i32, i32
  }
  func.func @transform_1(%arg0: i32) -> (i32, i32) {
    %c0_i32 = arith.constant 0 : i32
    %c0_i32_0 = arith.constant 0 : i32
    %c0_i32_1 = arith.constant 0 : i32
    return %c0_i32, %c0_i32_0 : i32, i32
  }
  func.func @transform_2(%arg0: i32) -> (i32, i32) {
    %c0_i32 = arith.constant 0 : i32
    %c0_i32_0 = arith.constant 0 : i32
    %c0_i32_1 = arith.constant 0 : i32
    return %c0_i32, %c0_i32_0 : i32, i32
  }
  func.func @transform_3(%arg0: i32) -> (i32, i32) {
    %c0_i32 = arith.constant 0 : i32
    %c0_i32_0 = arith.constant 0 : i32
    %c0_i32_1 = arith.constant 0 : i32
    return %c0_i32, %c0_i32_0 : i32, i32
  }
  func.func @transform_4(%arg0: i32) -> (i32, i32) {
    %c0_i32 = arith.constant 0 : i32
    %c0_i32_0 = arith.constant 0 : i32
    %c0_i32_1 = arith.constant 0 : i32
    return %c0_i32, %c0_i32_0 : i32, i32
  }
  func.func @transform_5(%arg0: i32) -> (i32, i32) {
    %c0_i32 = arith.constant 0 : i32
    %c0_i32_0 = arith.constant 0 : i32
    return %arg0, %c0_i32 : i32, i32
  }
}

</mosaic_0001>

<bundles_post_ra>
// kernel: qnet_forward.1
= control target key start
LH: loop header
LB: loop body
LE: loop exit
PB: predicated region body
PF: predicated region fallthrough
CT: control target
= control target key end

     0   :  { %10 = vsyncpa [#allocation3], 0  ;;  %s671_s0 = inlined_call_operand.vmem [shape: bf16[16,48], index: 0, kind: input, shape index: {}]   ;;  %s672_s1 = inlined_call_operand.hbm [shape: bf16[48,192], index: 1, kind: input, shape index: {}]   ;;  %s673_s2 = inlined_call_operand.vmem [shape: bf16[192,96], index: 2, kind: input, shape index: {}]   ;;  %s674_s3 = inlined_call_operand.hbm [shape: bf16[96,128], index: 3, kind: input, shape index: {}]   ;;  %s675_s4 = inlined_call_operand.vmem [shape: f32[1,512], index: 4, kind: input, shape index: {}]   ;;  %s676_s5 = inlined_call_operand.vmem [shape: f32[16,128], index: 5, kind: output, shape index: {}]  }
   0x1   :  { %11 = vsyncpa [#allocation5], 0  ;;  %s554_s18 = smov [#allocation2]   ;;  %s506_s22 = scalar_lea.hbm %s672_s1, 768 }
   0x2   :  { %s19_s19 = sshll.u32 %s554_s18, 4  ;;  %p507_p0 = scmp.ne.s32.totalorder %s672_s1, %s506_s22  ;;  %s20_s19 = int_to_ptr.vmem [resolvable:$true] %s19_s19 }
   0x3   :  { %p510_p1 = scmp.lt.u32.totalorder %s506_s22, %s672_s1 }
   0x5   :  { %p512_p2 = pnand %p510_p1, %p507_p0 }
   0x7   :  { %515 = shalt.err (!%p512_p2)
}
   0x8   :  { %s516_s27 = scalar_lea.vmem %s20_s19, 768  ;;  %p521_p4 = scmp.lt.s32.totalorder %s20_s19, %s20_s19 }
   0x9   :  { %p517_p3 = scmp.ne.s32.totalorder %s20_s19, %s516_s27  ;;  %p522_p5 = scmp.lt.s32.totalorder %s516_s27, %s516_s27 }
   0xb   :  { %p523_p6 = por %p522_p5, %p521_p4 }
   0xd   :  { %p524_p7 = pnand %p523_p6, %p517_p3 }
   0xf   :  { %527 = shalt.err (!%p524_p7)
}
  0x10   :  { %s555_s28 = smov 128   ;;  %s556_s29 = smov 8  }
  0x11   :  { %25 = dma.hbm_to_vmem [thread:$0]  %s672_s1, 768, %s20_s19, [#allocation3], %s555_s28, %s555_s28, %s556_s29  }
  0x12   :  { %s557_s7 = smov [#allocation4]   ;;  %s528_s11 = scalar_lea.hbm %s674_s3, 768 }
  0x13   :  { %s33_s8 = sshll.u32 %s557_s7, 4  ;;  %p529_p8 = scmp.ne.s32.totalorder %s674_s3, %s528_s11  ;;  %s34_s8 = int_to_ptr.vmem [resolvable:$true] %s33_s8 }
  0x14   :  { %p532_p9 = scmp.lt.u32.totalorder %s528_s11, %s674_s3 }
  0x16   :  { %p534_p10 = pnand %p532_p9, %p529_p8 }
  0x18   :  { %537 = shalt.err (!%p534_p10)
}
  0x19   :  { %s538_s16 = scalar_lea.vmem %s34_s8, 768  ;;  %p543_p12 = scmp.lt.s32.totalorder %s34_s8, %s34_s8 }
  0x1a   :  { %p539_p11 = scmp.ne.s32.totalorder %s34_s8, %s538_s16  ;;  %p544_p13 = scmp.lt.s32.totalorder %s538_s16, %s538_s16 }
  0x1c   :  { %p545_p0 = por %p544_p13, %p543_p12 }
  0x1e   :  { %p546_p1 = pnand %p545_p0, %p539_p11 }
  0x20   :  { %549 = shalt.err (!%p546_p1)
}
  0x21   :  { %s558_s1 = smov 64   ;;  %s559_s17 = smov 4  }
  0x22   :  { %39 = dma.hbm_to_vmem [thread:$0]  %s674_s3, 768, %s34_s8, [#allocation5], %s558_s1, %s558_s1, %s559_s17  }
  0x23   :  { %550 = dma.done.wait [#allocation3], 768  }
  0x24   :  { %551 = vsyncadd [#allocation3], 4294966528 }
  0x25   :  { %552 = dma.done.wait [#allocation5], 768  }
  0x26   :  { %553 = vsyncadd [#allocation5], 4294966528  ;;  %v560_v0 = vmov 0   ;;  %v478_v1 = vld [vmem:[#allocation2 + $0x4] ss:$8 sps:$4 sm:$0xff]   ;;  %vm106_vm0 = vcmask 392192   ;;  %v61_v25 = vlaneseq }
  0x27   :  { %142 = vmatprep.mubr.bf16.mxu0 %v560_v0  ;;  %265 = vmatprep.subr.bf16.mxu1 %v560_v0  ;;  %v480_v2 = vld [vmem:[#allocation2] ss:$8 sps:$4 sm:$0xff]   ;;  %v481_v3 = vld [vmem:[#allocation2 + $0x14] ss:$8 sps:$4 sm:$0xff]   ;;  %v483_v4 = vld [vmem:[#allocation2 + $0x10] ss:$8 sps:$4 sm:$0xff]  }
  0x28   :  { %110 = vmatprep.subr.bf16.mxu0 %v478_v1  ;;  %v484_v5 = vld [vmem:[#allocation2 + $0x24] ss:$8 sps:$4 sm:$0xff]   ;;  %v486_v7 = vld [vmem:[#allocation2 + $0x20] ss:$8 sps:$4 sm:$0xff]   ;;  %v490_v10 = vld [vmem:[%s673_s2 + $0x10] sm:$0xff]   ;;  %v561_v21 = vmov 0.0  }
  0x29   :  { %111 = vmatpush1.bf16.msra.mxu0 %v480_v2  ;;  %v488_v6 = vld [vmem:[%s673_s2] sm:$0xff]   ;;  %v489_v8 = vld [vmem:[%s673_s2 + $0x8] sm:$0xff]   ;;  %v491_v11 = vld [vmem:[%s673_s2 + $0x18] sm:$0xff]   ;;  %v62_v26 = vshrl.u32 %v61_v25, 7  ;;  %vm261_vm1 = vcmask 523264   ;;  %vm562_vm2 = vmmov 0  }
  0x2a   :  { %112 = vmatprep.subr.bf16.mxu0 %v481_v3  ;;  %266 = vmatpush1.bf16.msra.mxu1 %v488_v6  ;;  %v487_v9 = vld [vmem:[%s671_s0] sm:$0xff]   ;;  %v493_v13 = vld [vmem:[%s673_s2 + $0x28] sm:$0xff]   ;;  %v494_v14 = vld [vmem:[%s673_s2 + $0x30] sm:$0xff]   ;;  %vm363_vm3 = vcmask 785408  }
  0x2b   :  { %267 = vmatprep.subr.bf16.mxu1 %v560_v0  ;;  %v492_v12 = vld [vmem:[%s673_s2 + $0x20] sm:$0xff]   ;;  %v495_v15 = vld [vmem:[%s673_s2 + $0x38] sm:$0xff]   ;;  %v497_v17 = vld [vmem:[%s673_s2 + $0x48] sm:$0xff]   ;;  %v63_v27 = vsub.s32 0, %v62_v26  ;;  %v67_v29 = vsub.s32 1, %v62_v26 }
  0x2c   :  { %v496_v16 = vld [vmem:[%s673_s2 + $0x40] sm:$0xff]   ;;  %v498_v18 = vld [vmem:[%s673_s2 + $0x50] sm:$0xff]   ;;  %v499_v19 = vld [vmem:[%s673_s2 + $0x58] sm:$0xff]  }
  0x2d   :  { %113 = vmatpush1.bf16.msra.mxu0 %v483_v4  ;;  %v500_v20 = vld [vmem:[#allocation4] sm:$0xff]   ;;  %v501_v22 = vld [vmem:[#allocation4 + $0x8] sm:$0xff]   ;;  %v502_v23 = vld [vmem:[#allocation4 + $0x10] sm:$0xff]  }
  0x2e   :  { %114 = vmatprep.subr.bf16.mxu0 %v484_v5  ;;  %268 = vmatpush1.bf16.msra.mxu1 %v489_v8  ;;  %v503_v24 = vld [vmem:[#allocation4 + $0x18] sm:$0xff]   ;;  %v49_v28 = vld [vmem:[%s675_s4] sm:$0x3]  ;;  %v504_v46 = vld [vmem:[#allocation4 + $0x20] sm:$0xff]  }
  0x2f   :  { %269 = vmatprep.subr.bf16.mxu1 %v560_v0  ;;  %v64_v30 = vrot.slane %v49_v28, %v63_v27  ;;  %v68_v31 = vrot.slane %v49_v28, %v67_v29  ;;  %v505_v47 = vld [vmem:[#allocation4 + $0x28] sm:$0xff]   ;;  %v424_v48 = vld [vmem:[%s675_s4 + $0x2] ss:$0 sm:$0xff]  ;;  %v438_v58 = vld [vmem:[%s675_s4 + $0x3] ss:$0 sm:$0xff] }
  0x31   :  { %115 = vmatpush1.bf16.msra.mxu0 %v486_v7 }
  0x32   :  { %270 = vmatpush1.bf16.msra.mxu1 %v490_v10  ;;  %453 = vmatprep.subr.bf16.mxu0 %v561_v21 }
  0x33   :  { %271 = vmatprep.subr.bf16.mxu1 %v560_v0 }
  0x34   :  { %423 = vmatmul.mubr.msk.bf16.vlgmr.msra.gmra.mrb[0].mxu0 %vm106_vm0, %v487_v9 }
  0x35   :  { %454 = vmatpush3.bf16.msra.mxu0 %v500_v20  ;;  %465 = vmatprep.mubr.msk.bf16.mxu0 %vm562_vm2, %v561_v21 }
  0x36   :  { %272 = vmatpush1.bf16.msra.mxu1 %v491_v11  ;;  %455 = vmatprep.subr.bf16.mxu0 %v561_v21 }
  0x37   :  { %273 = vmatprep.subr.bf16.mxu1 %v560_v0 }
  0x39   :  { %456 = vmatpush3.bf16.msra.mxu0 %v501_v22 }
  0x3a   :  { %274 = vmatpush1.bf16.msra.mxu1 %v492_v12  ;;  %457 = vmatprep.subr.bf16.mxu0 %v561_v21 }
  0x3b   :  { %275 = vmatprep.subr.bf16.mxu1 %v560_v0 }
  0x3d   :  { %458 = vmatpush3.bf16.msra.mxu0 %v502_v23 }
  0x3e   :  { %276 = vmatpush1.bf16.msra.mxu1 %v493_v13  ;;  %459 = vmatprep.subr.bf16.mxu0 %v561_v21 }
  0x3f   :  { %277 = vmatprep.subr.bf16.mxu1 %v560_v0 }
  0x41   :  { %460 = vmatpush3.bf16.msra.mxu0 %v503_v24 }
  0x42   :  { %278 = vmatpush1.bf16.msra.mxu1 %v494_v14  ;;  %461 = vmatprep.subr.bf16.mxu0 %v561_v21 }
  0x43   :  { %279 = vmatprep.subr.bf16.mxu1 %v560_v0 }
  0x45   :  { %462 = vmatpush3.bf16.msra.mxu0 %v504_v46 }
  0x46   :  { %280 = vmatpush1.bf16.msra.mxu1 %v495_v15  ;;  %463 = vmatprep.subr.bf16.mxu0 %v561_v21 }
  0x47   :  { %281 = vmatprep.subr.bf16.mxu1 %v560_v0 }
  0x49   :  { %464 = vmatpush3.bf16.msra.mxu0 %v505_v47 }
  0x4a   :  { %282 = vmatpush1.bf16.msra.mxu1 %v496_v16 }
  0x4b   :  { %283 = vmatprep.subr.bf16.mxu1 %v560_v0 }
  0x4e   :  { %284 = vmatpush1.bf16.msra.mxu1 %v497_v17 }
  0x4f   :  { %285 = vmatprep.subr.bf16.mxu1 %v560_v0 }
  0x52   :  { %286 = vmatpush1.bf16.msra.mxu1 %v498_v18 }
  0x53   :  { %287 = vmatprep.subr.bf16.mxu1 %v560_v0 }
  0x56   :  { %288 = vmatpush1.bf16.msra.mxu1 %v499_v19 }
 0x107   :  { %v144_v32 = vpop.f32.mrb[0].mxu0 }
 0x108   :  { %v145_v33 = vadd.f32 %v144_v32, %v64_v30  ;;  %v146_v34 = vpop.f32.mrb[1].mxu0 }
 0x109   :  { %v147_v35 = vadd.f32 %v146_v34, %v68_v31  ;;  %v148_v36 = vpop.f32.mrb[2].mxu0 }
 0x10a   :  { %v149_v37 = vadd.f32 %v148_v36, %v64_v30  ;;  %v150_v38 = vpop.f32.mrb[3].mxu0  ;;  %v153_v40 = vmax.f32 %v145_v33, 0.0 }
 0x10b   :  { %v151_v39 = vadd.f32 %v150_v38, %v68_v31  ;;  %v154_v42 = vmax.f32 %v147_v35, 0.0 }
 0x10c   :  { %v155_v41 = vmax.f32 %v149_v37, 0.0 }
 0x10d   :  { %v156_v43 = vmax.f32 %v151_v39, 0.0 }
 0x10e   :  { %v157_v44 = vpack.c.bf16 %v155_v41, %v153_v40 }
 0x10f   :  { %v158_v45 = vpack.c.bf16 %v156_v43, %v154_v42 }
 0x111   :  { %437 = vmatprep.mubr.msk.bf16.mxu1 %vm261_vm1, %v158_v45 }
 0x112   :  { %298 = vmatmul.mubr.bf16.vlgmr.msra.gmra.mrb[0].mxu1 %v157_v44 }
 0x1e5   :  { %v299_v49 = vpop.f32.mrb[0].mxu1 }
 0x1e6   :  { %v300_v50 = vadd.f32 %v424_v48, %v299_v49  ;;  %v301_v51 = vpop.f32.mrb[1].mxu1 }
 0x1e7   :  { %v302_v52 = vpop.f32.mrb[2].mxu1 }
 0x1e8   :  { %v303_v53 = vadd.f32 %v424_v48, %v302_v52  ;;  %v304_v54 = vpop.f32.mrb[3].mxu1  ;;  %v306_v55 = vmax.f32 %v300_v50, 0.0 }
 0x1ea   :  { %v307_v56 = vmax.f32 %v303_v53, 0.0 }
 0x1ec   :  { %v308_v57 = vpack.c.bf16 %v307_v56, %v306_v55 }
 0x1ee   :  { %466 = vmatmul.mubr.msk.bf16.vlgmr.msra.gmra.mrb[4].mxu0 %vm363_vm3, %v308_v57 }
 0x2c1   :  { %v401_v59 = vpop.f32.mrb[4].mxu0 }
 0x2c2   :  { %v402_v60 = vadd.f32 %v438_v58, %v401_v59  ;;  %v467_v61 = vpop.f32.mrb[5].mxu0 }
 0x2c3   :  { %v404_v62 = vpop.f32.mrb[6].mxu0 }
 0x2c4   :  { %408 = vst [vmem:[%s676_s5] sm:$0xff] %v402_v60  ;;  %v405_v63 = vadd.f32 %v438_v58, %v404_v62  ;;  %v468_v0 = vpop.f32.mrb[7].mxu0 }
 0x2c6   :  { %409 = vst [vmem:[%s676_s5 + $0x8] sm:$0xff] %v405_v63 }
 0x2c7   :  { %414 = vsyncpa [#allocation3], 1 }
 0x2c8   :  { %415 = vsyncpa [#allocation5], 1 }

</bundles_post_ra>
